<compile_context>
chip_gen: v6e
topology: v6e:2x2x1
jax: 0.10.0
libtpu: 0.0.40
codegen_flags: <defaults>
</compile_context>

<pallas_src>
import jax
import jax.numpy as jnp
from jax.experimental import pallas as pl
from jax.experimental.pallas import tpu as pltpu


def _round_up(x, m):
    return (x + m - 1) // m * m


def _highway_kernel(x_ref, w_ref, b_ref, o_ref):
    x = x_ref[...]                                    # native dtype (f32/bf16)

    # Single fused matmul: [tm, E] @ [E, 2E] -> [tm, 2E], f32 accumulation.
    y = jnp.dot(x, w_ref[...], preferred_element_type=jnp.float32)
    y = y + b_ref[...].astype(jnp.float32)

    e = o_ref.shape[-1]                               # padded embed size (mult of 128)
    x_proj = jnp.maximum(y[:, :e], 0.0)               # relu       (VPU)
    x_gate = jax.nn.sigmoid(y[:, e:])                 # sigmoid    (EUP exp + recip)

    xf = x.astype(jnp.float32)
    out = xf + x_gate * (x_proj - xf)                 # 1 sub, 1 mul, 1 add
    o_ref[...] = out.astype(o_ref.dtype)


def highway_forward(x, wp_t, bp, wg_t, bg, *, row_tile=256):
    """Highway forward.

    x:    [..., E]
    wp_t: [E, E]  (transposed projection weight, i.e. W_proj.T)
    bp:   [E]
    wg_t: [E, E]  (transposed gate weight, i.e. W_gate.T)
    bg:   [E]
    """
    orig_shape = x.shape
    E = orig_shape[-1]
    x2d = x.reshape(-1, E)
    n_rows = x2d.shape[0]

    # --- Pad embed dim to a lane-dense multiple of 128. ---
    E_pad = _round_up(E, 128)
    pad_e = E_pad - E
    if pad_e:
        x2d = jnp.pad(x2d, ((0, 0), (0, pad_e)))
        wp_t = jnp.pad(wp_t, ((0, pad_e), (0, pad_e)))
        wg_t = jnp.pad(wg_t, ((0, pad_e), (0, pad_e)))
        bp = jnp.pad(bp, (0, pad_e))
        bg = jnp.pad(bg, (0, pad_e))

    # --- Fuse the two linear layers into one [E, 2E] operand. ---
    w_fused = jnp.concatenate([wp_t, wg_t], axis=1)        # [E_pad, 2*E_pad]
    b_fused = jnp.concatenate([bp, bg], axis=0).reshape(1, 2 * E_pad)

    # --- Pick the row tile: big for real workloads, clamped for tiny ones. ---
    tm = min(row_tile, _round_up(n_rows, 8))
    tm = max(tm, 8)

    pad_r = (-n_rows) % tm
    if pad_r:
        x2d = jnp.pad(x2d, ((0, pad_r), (0, 0)))
    n_padded = x2d.shape[0]
    grid = (n_padded // tm,)

    # --- VMEM budget: resident fused weight (x2 buffers) + double-buffered
    #     x/out tiles + f32 matmul intermediate, with headroom. ---
    # TODO(synk): for very large E (>~2048 on v7x's 64 MiB VMEM), tile the
    # fused weight along its output dim with a second grid axis instead of
    # keeping it fully resident.
    itemsize_x = jnp.dtype(x.dtype).itemsize
    w_bytes = w_fused.size * jnp.dtype(w_fused.dtype).itemsize
    b_bytes = b_fused.size * jnp.dtype(b_fused.dtype).itemsize
    x_tile_bytes = tm * E_pad * itemsize_x
    o_tile_bytes = tm * E_pad * itemsize_x
    y_bytes = tm * 2 * E_pad * 4
    vmem_needed = 2 * (w_bytes + b_bytes) + 2 * x_tile_bytes + 2 * o_tile_bytes + y_bytes
    vmem_limit = min(int(vmem_needed * 1.5) + (4 << 20), 100 << 20)

    cost = pl.CostEstimate(
        flops=2 * n_padded * E_pad * (2 * E_pad),
        transcendentals=n_padded * E_pad,
        bytes_accessed=(x2d.size * itemsize_x
                        + n_padded * E_pad * itemsize_x
                        + w_bytes + b_bytes),
    )

    out = pl.pallas_call(
        _highway_kernel,
        out_shape=jax.ShapeDtypeStruct((n_padded, E_pad), x.dtype),
        grid_spec=pltpu.PrefetchScalarGridSpec(
            num_scalar_prefetch=0,
            grid=grid,
            in_specs=[
                pl.BlockSpec((tm, E_pad), lambda i: (i, 0)),           # x tile
                pl.BlockSpec((E_pad, 2 * E_pad), lambda i: (0, 0)),    # fused W (resident)
                pl.BlockSpec((1, 2 * E_pad), lambda i: (0, 0)),        # fused bias
            ],
            out_specs=pl.BlockSpec((tm, E_pad), lambda i: (i, 0)),
        ),
        compiler_params=pltpu.CompilerParams(
            dimension_semantics=("parallel",),
            vmem_limit_bytes=vmem_limit,
        ),
        cost_estimate=cost,
    )(x2d, w_fused, b_fused)

    out = out[:n_rows, :E]
    return out.reshape(orig_shape)


def _reference(x, wp_t, bp, wg_t, bg):
    x_proj = jax.nn.relu(x @ wp_t + bp)
    x_gate = jax.nn.sigmoid(x @ wg_t + bg)
    return x_gate * x_proj + x * (1.0 - x_gate)


if __name__ == "__main__":
    key = jax.random.PRNGKey(0)
    k_x, k_wp, k_bp, k_wg, k_bg = jax.random.split(key, 5)

    B, S, E = 2, 8, 32   # batch, seq (e.g. word positions), embed size

    x = jax.random.normal(k_x, (B, S, E), dtype=jnp.float32)

    # PyTorch nn.Linear stores W as [out, in]; we pass W.T = [in, out].
    wp = 0.1 * jax.random.normal(k_wp, (E, E), dtype=jnp.float32)  # W_proj
    bp = 0.1 * jax.random.normal(k_bp, (E,), dtype=jnp.float32)
    wg = 0.1 * jax.random.normal(k_wg, (E, E), dtype=jnp.float32)  # W_gate
    bg = 0.1 * jax.random.normal(k_bg, (E,), dtype=jnp.float32)

    wp_t = wp.T
    wg_t = wg.T

    out = highway_forward(x, wp_t, bp, wg_t, bg)
    out = jax.block_until_ready(out)

    ref = _reference(x, wp_t, bp, wg_t, bg)
    assert out.shape == x.shape
    assert jnp.allclose(out, ref, atol=1e-5, rtol=1e-5), "mismatch vs reference"

    print("KERNEL_OK")
</pallas_src>

<mosaic_0001>
module attributes {stable_mosaic.version = 11 : i64} {
  func.func @_highway_kernel(%arg0: i32, %arg1: memref<16x128xf32, #tpu.memory_space<vmem>>, %arg2: memref<128x256xf32, #tpu.memory_space<vmem>>, %arg3: memref<1x256xf32, #tpu.memory_space<vmem>>, %arg4: memref<16x128xf32, #tpu.memory_space<vmem>>) attributes {dimension_semantics = [#tpu.dimension_semantics<parallel>], iteration_bounds = array<i64: 1>, scalar_prefetch = 0 : i64, scratch_operands = 0 : i64, tpu.core_type = #tpu.core_type<tc>, window_params = [{transform_indices = @transform_0, window_bounds = array<i64: 16, 128>}, {pipeline_mode = #tpu.pipeline_mode<synchronous>, transform_indices = @transform_1, window_bounds = array<i64: 128, 256>}, {pipeline_mode = #tpu.pipeline_mode<synchronous>, transform_indices = @transform_2, window_bounds = array<i64: 1, 256>}, {transform_indices = @transform_3, window_bounds = array<i64: 16, 128>}]} {
    %c0 = arith.constant 0 : index
    %c0_0 = arith.constant 0 : index
    %0 = vector.load %arg1[%c0, %c0_0] : memref<16x128xf32, #tpu.memory_space<vmem>>, vector<16x128xf32>
    %c0_1 = arith.constant 0 : index
    %c0_2 = arith.constant 0 : index
    %1 = vector.load %arg2[%c0_1, %c0_2] : memref<128x256xf32, #tpu.memory_space<vmem>>, vector<128x256xf32>
    %cst = arith.constant dense<0.000000e+00> : vector<16x256xf32>
    %2 = tpu.matmul %0, %1, %cst {dimension_numbers = #tpu.dot_dimension_numbers<[1], [0], [0], [1], [0, 0, 1, 1], [], []>} : vector<16x128xf32>, vector<128x256xf32>, vector<16x256xf32> -> vector<16x256xf32>
    %c0_3 = arith.constant 0 : index
    %c0_4 = arith.constant 0 : index
    %3 = vector.load %arg3[%c0_3, %c0_4] : memref<1x256xf32, #tpu.memory_space<vmem>>, vector<1x256xf32>
    %4 = vector.broadcast %3 : vector<1x256xf32> to vector<16x256xf32>
    %5 = arith.addf %2, %4 : vector<16x256xf32>
    %6 = vector.extract_strided_slice %5 {offsets = [0, 0], sizes = [16, 128], strides = [1, 1]} : vector<16x256xf32> to vector<16x128xf32>
    %cst_5 = arith.constant 0.000000e+00 : f32
    %7 = vector.broadcast %cst_5 : f32 to vector<16x128xf32>
    %8 = arith.maximumf %6, %7 : vector<16x128xf32>
    %9 = vector.extract_strided_slice %5 {offsets = [0, 128], sizes = [16, 128], strides = [1, 1]} : vector<16x256xf32> to vector<16x128xf32>
    %10 = arith.negf %9 : vector<16x128xf32>
    %11 = math.exp %10 : vector<16x128xf32>
    %cst_6 = arith.constant 1.000000e+00 : f32
    %12 = vector.broadcast %cst_6 : f32 to vector<16x128xf32>
    %13 = arith.addf %12, %11 : vector<16x128xf32>
    %14 = arith.divf %12, %13 : vector<16x128xf32>
    %15 = arith.subf %8, %0 : vector<16x128xf32>
    %16 = arith.mulf %14, %15 : vector<16x128xf32>
    %17 = arith.addf %0, %16 : vector<16x128xf32>
    %c0_7 = arith.constant 0 : index
    %c0_8 = arith.constant 0 : index
    %18 = vector.load %arg4[%c0_7, %c0_8] : memref<16x128xf32, #tpu.memory_space<vmem>>, vector<16x128xf32>
    tpu.vector_store %arg4[%c0_7, %c0_8], %17 {strides = array<i32>} : memref<16x128xf32, #tpu.memory_space<vmem>>, vector<16x128xf32>,
    return
  }
  func.func @transform_0(%arg0: i32) -> (i32, i32) {
    %c0_i32 = arith.constant 0 : i32
    %c0_i32_0 = arith.constant 0 : i32
    return %arg0, %c0_i32 : i32, i32
  }
  func.func @transform_1(%arg0: i32) -> (i32, i32) {
    %c0_i32 = arith.constant 0 : i32
    %c0_i32_0 = arith.constant 0 : i32
    %c0_i32_1 = arith.constant 0 : i32
    return %c0_i32, %c0_i32_0 : i32, i32
  }
  func.func @transform_2(%arg0: i32) -> (i32, i32) {
    %c0_i32 = arith.constant 0 : i32
    %c0_i32_0 = arith.constant 0 : i32
    %c0_i32_1 = arith.constant 0 : i32
    return %c0_i32, %c0_i32_0 : i32, i32
  }
  func.func @transform_3(%arg0: i32) -> (i32, i32) {
    %c0_i32 = arith.constant 0 : i32
    %c0_i32_0 = arith.constant 0 : i32
    return %arg0, %c0_i32 : i32, i32
  }
}

</mosaic_0001>

<bundles_post_ra>
// kernel: tpu_custom_call.1
= control target key start
LH: loop header
LB: loop body
LE: loop exit
PB: predicated region body
PF: predicated region fallthrough
CT: control target
= control target key end

     0   :  { %8 = vsyncpa [#allocation3], 0  ;;  %s368_s0 = inlined_call_operand.hbm [shape: f32[16,128], index: 0, kind: input, shape index: {}]   ;;  %s369_s1 = inlined_call_operand.hbm [shape: f32[128,256], index: 1, kind: input, shape index: {}]   ;;  %s370_s2 = inlined_call_operand.vmem [shape: f32[1,256], index: 2, kind: input, shape index: {}]   ;;  %s371_s3 = inlined_call_operand.hbm [shape: f32[16,128], index: 3, kind: output, shape index: {}]  }
   0x1   :  { %9 = vsyncpa [#allocation6], 0 }
   0x2   :  { %10 = vsyncpa [#allocation4], 0  ;;  %s322_s12 = smov [#allocation2]  }
   0x3   :  { %s16_s13 = sshll.u32 %s322_s12, 4  ;;  %s17_s13 = int_to_ptr.vmem [resolvable:$true] %s16_s13 }
   0x4   :  { %s264_s14 = scalar_lea.vmem %s17_s13, 256  ;;  %p269_p1 = scmp.lt.s32.totalorder %s17_s13, %s17_s13 }
   0x5   :  { %p265_p0 = scmp.ne.s32.totalorder %s17_s13, %s264_s14  ;;  %p270_p2 = scmp.lt.s32.totalorder %s264_s14, %s264_s14 }
   0x7   :  { %p271_p3 = por %p270_p2, %p269_p1 }
   0x9   :  { %p272_p4 = pnand %p271_p3, %p265_p0 }
   0xb   :  { %275 = shalt.err (!%p272_p4)
}
   0xc   :  { %s323_s15 = smov 128   ;;  %s324_s16 = smov 8  }
   0xd   :  { %22 = dma.hbm_to_vmem [thread:$0]  %s368_s0, 256, %s17_s13, [#allocation3], %s323_s15, %s323_s15, %s324_s16  }
   0xe   :  { %s325_s19 = smov [#allocation5]  }
   0xf   :  { %s28_s20 = sshll.u32 %s325_s19, 4  ;;  %s29_s20 = int_to_ptr.vmem [resolvable:$true] %s28_s20 }
  0x10   :  { %s284_s21 = scalar_lea.vmem %s29_s20, 4096  ;;  %p289_p6 = scmp.lt.s32.totalorder %s29_s20, %s29_s20 }
  0x11   :  { %p285_p5 = scmp.ne.s32.totalorder %s29_s20, %s284_s21  ;;  %p290_p7 = scmp.lt.s32.totalorder %s284_s21, %s284_s21 }
  0x13   :  { %p291_p8 = por %p290_p7, %p289_p6 }
  0x15   :  { %p292_p9 = pnand %p291_p8, %p285_p5 }
  0x17   :  { %295 = shalt.err (!%p292_p9)
}
  0x18   :  { %s326_s22 = smov 256   ;;  %s327_s23 = smov 16  }
  0x19   :  { %34 = dma.hbm_to_vmem [thread:$0]  %s369_s1, 4096, %s29_s20, [#allocation6], %s326_s22, %s326_s22, %s327_s23  }
  0x1a   :  { %316 = dma.done.wait [#allocation3], 256  }
  0x1b   :  { %317 = vsyncadd [#allocation3], 4294967040 }
  0x1c   :  { %318 = dma.done.wait [#allocation6], 4096  }
  0x1d   :  { %319 = vsyncadd [#allocation6], 4294963200  ;;  %v328_v0 = vmov 0.0   ;;  %v76_v1 = vld [vmem:[#allocation5 + $0xf8] sm:$0xff]  ;;  %v75_v2 = vld [vmem:[#allocation5 + $0xf0] sm:$0xff]  ;;  %v79_v35 = vlaneseq }
  0x1e   :  { %153 = vmatprep.mubr.f32.mxu0 %v328_v0  ;;  %159 = vmatprep.mubr.f32.mxu1 %v328_v0  ;;  %v74_v3 = vld [vmem:[#allocation5 + $0xe8] sm:$0xff]  ;;  %v73_v4 = vld [vmem:[#allocation5 + $0xe0] sm:$0xff]  ;;  %v72_v5 = vld [vmem:[#allocation5 + $0xd8] sm:$0xff] }
  0x1f   :  { %89 = vmatprep.subr.mxu0 %v76_v1  ;;  %208 = vmatprep.subr.mxu1 %v76_v1  ;;  %v71_v6 = vld [vmem:[#allocation5 + $0xd0] sm:$0xff]  ;;  %v70_v7 = vld [vmem:[#allocation5 + $0xc8] sm:$0xff]  ;;  %v69_v8 = vld [vmem:[#allocation5 + $0xc0] sm:$0xff]  ;;  %v80_v36 = vshrl.u32 %v79_v35, 7 }
  0x20   :  { %90 = vmatpush1.msra.mxu0 %v75_v2  ;;  %224 = vmatpush1.msra.mxu1 %v75_v2  ;;  %v68_v9 = vld [vmem:[#allocation5 + $0xb8] sm:$0xff]  ;;  %v67_v10 = vld [vmem:[#allocation5 + $0xb0] sm:$0xff]  ;;  %v66_v11 = vld [vmem:[#allocation5 + $0xa8] sm:$0xff] }
  0x21   :  { %91 = vmatprep.subr.mxu0 %v74_v3  ;;  %209 = vmatprep.subr.mxu1 %v74_v3  ;;  %v65_v12 = vld [vmem:[#allocation5 + $0xa0] sm:$0xff]  ;;  %v64_v13 = vld [vmem:[#allocation5 + $0x98] sm:$0xff]  ;;  %v63_v14 = vld [vmem:[#allocation5 + $0x90] sm:$0xff]  ;;  %v85_v37 = vsub.s32 1, %v80_v36  ;;  %v81_v48 = vsub.s32 0, %v80_v36 }
  0x22   :  { %92 = vmatpush1.msra.mxu0 %v73_v4  ;;  %225 = vmatpush1.msra.mxu1 %v73_v4  ;;  %v62_v15 = vld [vmem:[#allocation5 + $0x88] sm:$0xff]  ;;  %v61_v16 = vld [vmem:[#allocation5 + $0x80] sm:$0xff]  ;;  %v60_v17 = vld [vmem:[#allocation5 + $0x78] sm:$0xff] }
  0x23   :  { %93 = vmatprep.subr.mxu0 %v72_v5  ;;  %210 = vmatprep.subr.mxu1 %v72_v5  ;;  %v59_v18 = vld [vmem:[#allocation5 + $0x70] sm:$0xff]  ;;  %v58_v19 = vld [vmem:[#allocation5 + $0x68] sm:$0xff]  ;;  %v57_v20 = vld [vmem:[#allocation5 + $0x60] sm:$0xff] }
  0x24   :  { %94 = vmatpush1.msra.mxu0 %v71_v6  ;;  %226 = vmatpush1.msra.mxu1 %v71_v6  ;;  %v56_v21 = vld [vmem:[#allocation5 + $0x58] sm:$0xff]  ;;  %v55_v22 = vld [vmem:[#allocation5 + $0x50] sm:$0xff]  ;;  %v54_v23 = vld [vmem:[#allocation5 + $0x48] sm:$0xff] }
  0x25   :  { %95 = vmatprep.subr.mxu0 %v70_v7  ;;  %211 = vmatprep.subr.mxu1 %v70_v7  ;;  %v53_v24 = vld [vmem:[#allocation5 + $0x40] sm:$0xff]  ;;  %v52_v25 = vld [vmem:[#allocation5 + $0x38] sm:$0xff]  ;;  %v51_v26 = vld [vmem:[#allocation5 + $0x30] sm:$0xff] }
  0x26   :  { %96 = vmatpush1.msra.mxu0 %v69_v8  ;;  %227 = vmatpush1.msra.mxu1 %v69_v8  ;;  %v50_v27 = vld [vmem:[#allocation5 + $0x28] sm:$0xff]  ;;  %v49_v28 = vld [vmem:[#allocation5 + $0x20] sm:$0xff]  ;;  %v48_v29 = vld [vmem:[#allocation5 + $0x18] sm:$0xff] }
  0x27   :  { %97 = vmatprep.subr.mxu0 %v68_v9  ;;  %212 = vmatprep.subr.mxu1 %v68_v9  ;;  %v47_v30 = vld [vmem:[#allocation5 + $0x10] sm:$0xff]  ;;  %v46_v31 = vld [vmem:[#allocation5 + $0x8] sm:$0xff]  ;;  %v45_v32 = vld [vmem:[#allocation5] sm:$0xff] }
  0x28   :  { %98 = vmatpush1.msra.mxu0 %v67_v10  ;;  %228 = vmatpush1.msra.mxu1 %v67_v10  ;;  %v43_v33 = vld [vmem:[#allocation2] sm:$0xff]  ;;  %v44_v34 = vld [vmem:[#allocation2 + $0x8] sm:$0xff] }
  0x29   :  { %99 = vmatprep.subr.mxu0 %v66_v11  ;;  %213 = vmatprep.subr.mxu1 %v66_v11  ;;  %v77_v38 = vld [vmem:[%s370_s2] sm:$0x3]  ;;  %s329_s2 = smov [#allocation7]  }
  0x2a   :  { %100 = vmatpush1.msra.mxu0 %v65_v12  ;;  %229 = vmatpush1.msra.mxu1 %v65_v12  ;;  %v86_v39 = vrot.slane %v77_v38, %v85_v37  ;;  %v82_v53 = vrot.slane %v77_v38, %v81_v48  ;;  %s193_s26 = sshll.u32 %s329_s2, 4  ;;  %s194_s26 = int_to_ptr.vmem [resolvable:$true] %s193_s26 }
  0x2b   :  { %101 = vmatprep.subr.mxu0 %v64_v13  ;;  %214 = vmatprep.subr.mxu1 %v64_v13  ;;  %s296_s27 = scalar_lea.vmem %s194_s26, 256  ;;  %p301_p11 = scmp.lt.s32.totalorder %s194_s26, %s194_s26 }
  0x2c   :  { %102 = vmatpush1.msra.mxu0 %v63_v14  ;;  %230 = vmatpush1.msra.mxu1 %v63_v14  ;;  %p297_p10 = scmp.ne.s32.totalorder %s194_s26, %s296_s27  ;;  %p302_p12 = scmp.lt.s32.totalorder %s296_s27, %s296_s27 }
  0x2d   :  { %103 = vmatprep.subr.mxu0 %v62_v15  ;;  %215 = vmatprep.subr.mxu1 %v62_v15 }
  0x2e   :  { %104 = vmatpush1.msra.mxu0 %v61_v16  ;;  %231 = vmatpush1.msra.mxu1 %v61_v16  ;;  %p303_p13 = por %p302_p12, %p301_p11 }
  0x2f   :  { %105 = vmatprep.subr.mxu0 %v60_v17  ;;  %216 = vmatprep.subr.mxu1 %v60_v17 }
  0x30   :  { %106 = vmatpush1.msra.mxu0 %v59_v18  ;;  %232 = vmatpush1.msra.mxu1 %v59_v18  ;;  %p304_p0 = pnand %p303_p13, %p297_p10 }
  0x31   :  { %107 = vmatprep.subr.mxu0 %v58_v19  ;;  %217 = vmatprep.subr.mxu1 %v58_v19 }
  0x32   :  { %108 = vmatpush1.msra.mxu0 %v57_v20  ;;  %233 = vmatpush1.msra.mxu1 %v57_v20 }
  0x33   :  { %109 = vmatprep.subr.mxu0 %v56_v21  ;;  %218 = vmatprep.subr.mxu1 %v56_v21 }
  0x34   :  { %110 = vmatpush1.msra.mxu0 %v55_v22  ;;  %234 = vmatpush1.msra.mxu1 %v55_v22 }
  0x35   :  { %111 = vmatprep.subr.mxu0 %v54_v23  ;;  %219 = vmatprep.subr.mxu1 %v54_v23 }
  0x36   :  { %112 = vmatpush1.msra.mxu0 %v53_v24  ;;  %235 = vmatpush1.msra.mxu1 %v53_v24 }
  0x37   :  { %113 = vmatprep.subr.mxu0 %v52_v25  ;;  %220 = vmatprep.subr.mxu1 %v52_v25 }
  0x38   :  { %114 = vmatpush1.msra.mxu0 %v51_v26  ;;  %236 = vmatpush1.msra.mxu1 %v51_v26 }
  0x39   :  { %115 = vmatprep.subr.mxu0 %v50_v27  ;;  %221 = vmatprep.subr.mxu1 %v50_v27 }
  0x3a   :  { %116 = vmatpush1.msra.mxu0 %v49_v28  ;;  %237 = vmatpush1.msra.mxu1 %v49_v28 }
  0x3b   :  { %117 = vmatprep.subr.mxu0 %v48_v29  ;;  %222 = vmatprep.subr.mxu1 %v48_v29 }
  0x3c   :  { %118 = vmatpush1.msra.mxu0 %v47_v30  ;;  %238 = vmatpush1.msra.mxu1 %v47_v30 }
  0x3d   :  { %119 = vmatprep.subr.mxu0 %v46_v31  ;;  %223 = vmatprep.subr.mxu1 %v46_v31 }
  0x3e   :  { %120 = vmatpush1.msra.mxu0 %v45_v32  ;;  %239 = vmatpush1.msra.mxu1 %v45_v32 }
  0x3f   :  { %154 = vmatmul.mubr.f32.vlgmr.msra.gmra.mxu0 %v43_v33  ;;  %160 = vmatmul.mubr.f32.vlgmr.msra.gmra.mxu1 %v44_v34 }
  0xff   :  { %v155_v40 = vpop.f32.mrf.mxu0  ;;  %v161_v41 = vpop.f32.mrf.mxu1 }
 0x100   :  { %v156_v54 = vadd.f32 %v155_v40, %v82_v53  ;;  %v162_v55 = vadd.f32 %v161_v41, %v82_v53 }
 0x101   :  { %v157_v42 = vpop.f32.mrf.mxu0  ;;  %v163_v43 = vpop.f32.mrf.mxu1 }
 0x102   :  { %v158_v44 = vadd.f32 %v157_v42, %v86_v39  ;;  %v164_v45 = vadd.f32 %v163_v43, %v86_v39  ;;  %v166_v56 = vmax.f32 %v156_v54, 0.0  ;;  %v167_v57 = vmax.f32 %v162_v55, 0.0 }
 0x104   :  { %v206_v46 = vmul.f32 -1.442695, %v158_v44  ;;  %v207_v47 = vmul.f32 -1.442695, %v164_v45  ;;  %v180_v58 = vsub.f32 %v166_v56, %v43_v33  ;;  %v181_v60 = vsub.f32 %v167_v57, %v44_v34 }
 0x106   :  { %248 = vpow2.f32 %v206_v46 }
 0x107   :  { %250 = vpow2.f32 %v207_v47 }
 0x113   :  { %v249_v49 = vpop.eup %248 }
 0x114   :  { %v251_v50 = vpop.eup %250  ;;  %v174_v51 = vadd.f32 1.0, %v249_v49 }
 0x115   :  { %v175_v52 = vadd.f32 1.0, %v251_v50 }
 0x116   :  { %252 = vrcp.f32 %v174_v51 }
 0x117   :  { %254 = vrcp.f32 %v175_v52 }
 0x123   :  { %v253_v59 = vpop.eup %252 }
 0x124   :  { %v255_v61 = vpop.eup %254  ;;  %v182_v62 = vmul.f32 %v253_v59, %v180_v58 }
 0x125   :  { %v183_v63 = vmul.f32 %v255_v61, %v181_v60 }
 0x126   :  { %v184_v0 = vadd.f32 %v182_v62, %v43_v33 }
 0x127   :  { %v185_v1 = vadd.f32 %v183_v63, %v44_v34 }
 0x128   :  { %186 = vst [vmem:[#allocation7] sm:$0xff] %v184_v0 }
 0x129   :  { %187 = vst [vmem:[#allocation7 + $0x8] sm:$0xff] %v185_v1 }
 0x12a   :  { %307 = shalt.err (!%p304_p0)
}
 0x12b   :  { %199 = dma.vmem_to_hbm [thread:$0]  %s194_s26, 256, %s371_s3, [#allocation4], %s323_s15, %s323_s15, %s324_s16  }
 0x12c   :  { %320 = dma.done.wait [#allocation4], 256  }
 0x12d   :  { %321 = vsyncadd [#allocation4], 4294967040 }
 0x12e   :  { %203 = vsyncpa [#allocation3], 1 }
 0x12f   :  { %204 = vsyncpa [#allocation6], 1 }
 0x130   :  { %205 = vsyncpa [#allocation4], 1 }

</bundles_post_ra>
